<compile_context>
chip_gen: v7x
topology: tpu7x:2x2x1
jax: 0.10.0
libtpu: 0.0.40
codegen_flags: <defaults>
</compile_context>

<pallas_src>
import jax
import jax.numpy as jnp
from jax.experimental import pallas as pl
from jax.experimental.pallas import tpu as pltpu

# cfg stand-ins: cfg.TEXT.DIMENSION, cfg.VIDEO_LEN, cfg.GAN.CONDITION_DIM
TEXT_DIMENSION = 16
VIDEO_LEN = 8
CONDITION_DIM = 32
T_DIM = TEXT_DIMENSION * VIDEO_LEN        # 128  (t_dim = TEXT.DIMENSION * VIDEO_LEN)
C_DIM = CONDITION_DIM                     # 32   (c_dim = GAN.CONDITION_DIM)


def _round_up(x, m):
    return ((x + m - 1) // m) * m


def _pick_tile(dim, unit, max_tile):
    """Smallest legal tile (multiple of `unit`) covering `dim`, capped; plus padded extent."""
    t = min(max_tile, _round_up(dim, unit))
    return t, _round_up(dim, t)


# -----------------------------------------------------------------------------
# Fused kernel: two MXU matmuls (mu / logvar halves) + bias + ReLU + exp + reparam.
# -----------------------------------------------------------------------------
def _ca_net_kernel(x_ref, wmu_ref, wlv_ref, bmu_ref, blv_ref, eps_ref,
                   c_ref, mu_ref, lv_ref, acc_mu, acc_lv):
    @pl.when(pl.program_id(2) == 0)
    def _():
        acc_mu[...] = jnp.zeros_like(acc_mu)
        acc_lv[...] = jnp.zeros_like(acc_lv)

    x = x_ref[...]                                            # bf16 tile (tm, tk)
    acc_mu[...] += jnp.dot(x, wmu_ref[...], preferred_element_type=jnp.float32)
    acc_lv[...] += jnp.dot(x, wlv_ref[...], preferred_element_type=jnp.float32)

    @pl.when(pl.program_id(2) == pl.num_programs(2) - 1)
    def _():
        # relu(fc(x)) applied to both halves == relu before the mu/logvar split.
        mu = jnp.maximum(acc_mu[...] + bmu_ref[...], 0.0)
        lv = jnp.maximum(acc_lv[...] + blv_ref[...], 0.0)
        std = jnp.exp(lv * 0.5)                               # EUP, f32
        mu_ref[...] = mu.astype(mu_ref.dtype)
        lv_ref[...] = lv.astype(lv_ref.dtype)
        c_ref[...] = (eps_ref[...] * std + mu).astype(c_ref.dtype)


def ca_net_forward(params, text_embedding, eps, *, tm_max=256, tn_max=256, tk_max=512):
    """Returns (c_code, mu, logvar), each (B, c_dim) float32."""
    B, K = text_embedding.shape
    fc_w, fc_b = params["fc_w"], params["fc_b"]               # (2*c_dim, t_dim), (2*c_dim,)
    c_dim = fc_w.shape[0] // 2
    assert K == fc_w.shape[1] and eps.shape == (B, c_dim)

    # Split the Linear column-wise (mu half / logvar half); pure weight prep.
    w_mu, w_lv = fc_w[:c_dim].T, fc_w[c_dim:].T               # (t_dim, c_dim)
    b_mu, b_lv = fc_b[:c_dim], fc_b[c_dim:]

    tm, Mp = _pick_tile(B, 8, tm_max)
    tn, Np = _pick_tile(c_dim, 128, tn_max)
    tk, Kp = _pick_tile(K, 128, tk_max)

    # bf16 MXU inputs; f32 bias / eps / outputs.
    xp = jnp.pad(text_embedding, ((0, Mp - B), (0, Kp - K))).astype(jnp.bfloat16)
    wmup = jnp.pad(w_mu, ((0, Kp - K), (0, Np - c_dim))).astype(jnp.bfloat16)
    wlvp = jnp.pad(w_lv, ((0, Kp - K), (0, Np - c_dim))).astype(jnp.bfloat16)
    bmup = jnp.pad(b_mu.reshape(1, c_dim).astype(jnp.float32), ((0, 0), (0, Np - c_dim)))
    blvp = jnp.pad(b_lv.reshape(1, c_dim).astype(jnp.float32), ((0, 0), (0, Np - c_dim)))
    epsp = jnp.pad(eps.astype(jnp.float32), ((0, Mp - B), (0, Np - c_dim)))

    out_shape = jax.ShapeDtypeStruct((Mp, Np), jnp.float32)
    row_col = lambda i, j, k: (i, j)

    c, mu, lv = pl.pallas_call(
        _ca_net_kernel,
        out_shape=(out_shape, out_shape, out_shape),
        grid_spec=pltpu.PrefetchScalarGridSpec(
            num_scalar_prefetch=0,
            grid=(Mp // tm, Np // tn, Kp // tk),
            in_specs=[
                pl.BlockSpec((tm, tk), lambda i, j, k: (i, k)),   # x
                pl.BlockSpec((tk, tn), lambda i, j, k: (k, j)),   # W_mu
                pl.BlockSpec((tk, tn), lambda i, j, k: (k, j)),   # W_logvar
                pl.BlockSpec((1, tn), lambda i, j, k: (0, j)),    # b_mu
                pl.BlockSpec((1, tn), lambda i, j, k: (0, j)),    # b_logvar
                pl.BlockSpec((tm, tn), row_col),                  # eps
            ],
            out_specs=[pl.BlockSpec((tm, tn), row_col)] * 3,
            scratch_shapes=[pltpu.VMEM((tm, tn), jnp.float32),
                            pltpu.VMEM((tm, tn), jnp.float32)],
        ),
        compiler_params=pltpu.CompilerParams(
            dimension_semantics=("parallel", "parallel", "arbitrary"),
            vmem_limit_bytes=64 * 1024 * 1024),
    )(xp, wmup, wlvp, bmup, blvp, epsp)

    return c[:B, :c_dim], mu[:B, :c_dim], lv[:B, :c_dim]


# -----------------------------------------------------------------------------
# Parameters (deterministic, PyTorch nn.Linear default init).
# -----------------------------------------------------------------------------
def make_params(key, t_dim=T_DIM, c_dim=C_DIM):
    k1, k2 = jax.random.split(key)
    bound = 1.0 / float(jnp.sqrt(jnp.float32(t_dim)))
    fc_w = jax.random.uniform(k1, (2 * c_dim, t_dim), jnp.float32, -bound, bound)
    fc_b = jax.random.uniform(k2, (2 * c_dim,), jnp.float32, -bound, bound)
    return {"fc_w": fc_w, "fc_b": fc_b}


if __name__ == "__main__":
    key = jax.random.PRNGKey(0)
    params = make_params(key)

    B = 2
    x = jax.random.normal(jax.random.fold_in(key, 1), (B, T_DIM), jnp.float32)
    eps = jax.random.normal(jax.random.fold_in(key, 2), (B, C_DIM), jnp.float32)

    c_code, mu, logvar = ca_net_forward(params, x, eps)
    jax.block_until_ready((c_code, mu, logvar))

    # Pure-JAX reference (same bf16 matmul dtype) as a correctness guard.
    y_ref = jnp.dot(x.astype(jnp.bfloat16), params["fc_w"].T.astype(jnp.bfloat16),
                    preferred_element_type=jnp.float32) + params["fc_b"]
    y_ref = jnp.maximum(y_ref, 0.0)
    mu_ref, lv_ref = y_ref[:, :C_DIM], y_ref[:, C_DIM:]
    c_ref = eps * jnp.exp(0.5 * lv_ref) + mu_ref

    assert c_code.shape == (B, C_DIM) and mu.shape == (B, C_DIM) and logvar.shape == (B, C_DIM)
    assert jnp.allclose(mu, mu_ref, atol=1e-3, rtol=1e-3)
    assert jnp.allclose(logvar, lv_ref, atol=1e-3, rtol=1e-3)
    assert jnp.allclose(c_code, c_ref, atol=1e-3, rtol=1e-3)
    print("KERNEL_OK")
</pallas_src>

<mosaic_0001>
module attributes {stable_mosaic.version = 11 : i64} {
  func.func @_ca_net_kernel(%arg0: i32, %arg1: i32, %arg2: i32, %arg3: memref<8x128xbf16, #tpu.memory_space<vmem>>, %arg4: memref<128x128xbf16, #tpu.memory_space<vmem>>, %arg5: memref<128x128xbf16, #tpu.memory_space<vmem>>, %arg6: memref<1x128xf32, #tpu.memory_space<vmem>>, %arg7: memref<1x128xf32, #tpu.memory_space<vmem>>, %arg8: memref<8x128xf32, #tpu.memory_space<vmem>>, %arg9: memref<8x128xf32, #tpu.memory_space<vmem>>, %arg10: memref<8x128xf32, #tpu.memory_space<vmem>>, %arg11: memref<8x128xf32, #tpu.memory_space<vmem>>, %arg12: memref<8x128xf32, #tpu.memory_space<vmem>>, %arg13: memref<8x128xf32, #tpu.memory_space<vmem>>) attributes {dimension_semantics = [#tpu.dimension_semantics<parallel>, #tpu.dimension_semantics<parallel>, #tpu.dimension_semantics<arbitrary>], iteration_bounds = array<i64: 1, 1, 1>, scalar_prefetch = 0 : i64, scratch_operands = 2 : i64, tpu.core_type = #tpu.core_type<tc>, window_params = [{transform_indices = @transform_0, window_bounds = array<i64: 8, 128>}, {transform_indices = @transform_1, window_bounds = array<i64: 128, 128>}, {transform_indices = @transform_2, window_bounds = array<i64: 128, 128>}, {transform_indices = @transform_3, window_bounds = array<i64: 1, 128>}, {transform_indices = @transform_4, window_bounds = array<i64: 1, 128>}, {transform_indices = @transform_5, window_bounds = array<i64: 8, 128>}, {transform_indices = @transform_6, window_bounds = array<i64: 8, 128>}, {transform_indices = @transform_7, window_bounds = array<i64: 8, 128>}, {transform_indices = @transform_8, window_bounds = array<i64: 8, 128>}]} {
    %c0_i32 = arith.constant 0 : i32
    %0 = arith.cmpi eq, %arg2, %c0_i32 : i32
    %1 = arith.extui %0 : i1 to i32
    %c0_i32_0 = arith.constant 0 : i32
    %2 = arith.cmpi ne, %1, %c0_i32_0 : i32
    scf.if %2 {
      %cst_17 = arith.constant 0.000000e+00 : f32
      %17 = vector.broadcast %cst_17 : f32 to vector<8x128xf32>
      %c0_18 = arith.constant 0 : index
      %c0_19 = arith.constant 0 : index
      %18 = vector.load %arg12[%c0_18, %c0_19] : memref<8x128xf32, #tpu.memory_space<vmem>>, vector<8x128xf32>
      tpu.vector_store %arg12[%c0_18, %c0_19], %17 {strides = array<i32>} : memref<8x128xf32, #tpu.memory_space<vmem>>, vector<8x128xf32>,
      %cst_20 = arith.constant 0.000000e+00 : f32
      %19 = vector.broadcast %cst_20 : f32 to vector<8x128xf32>
      %c0_21 = arith.constant 0 : index
      %c0_22 = arith.constant 0 : index
      %20 = vector.load %arg13[%c0_21, %c0_22] : memref<8x128xf32, #tpu.memory_space<vmem>>, vector<8x128xf32>
      tpu.vector_store %arg13[%c0_21, %c0_22], %19 {strides = array<i32>} : memref<8x128xf32, #tpu.memory_space<vmem>>, vector<8x128xf32>,
    } else {
    }
    %c0 = arith.constant 0 : index
    %c0_1 = arith.constant 0 : index
    %3 = vector.load %arg3[%c0, %c0_1] : memref<8x128xbf16, #tpu.memory_space<vmem>>, vector<8x128xbf16>
    %c0_2 = arith.constant 0 : index
    %c0_3 = arith.constant 0 : index
    %4 = vector.load %arg12[%c0_2, %c0_3] : memref<8x128xf32, #tpu.memory_space<vmem>>, vector<8x128xf32>
    %c0_4 = arith.constant 0 : index
    %c0_5 = arith.constant 0 : index
    %5 = vector.load %arg4[%c0_4, %c0_5] : memref<128x128xbf16, #tpu.memory_space<vmem>>, vector<128x128xbf16>
    %cst = arith.constant dense<0.000000e+00> : vector<8x128xf32>
    %6 = tpu.matmul %3, %5, %cst {dimension_numbers = #tpu.dot_dimension_numbers<[1], [0], [0], [1], [0, 0, 1, 1], [], []>} : vector<8x128xbf16>, vector<128x128xbf16>, vector<8x128xf32> -> vector<8x128xf32>
    %7 = arith.addf %4, %6 : vector<8x128xf32>
    %c0_6 = arith.constant 0 : index
    %c0_7 = arith.constant 0 : index
    %8 = vector.load %arg12[%c0_6, %c0_7] : memref<8x128xf32, #tpu.memory_space<vmem>>, vector<8x128xf32>
    tpu.vector_store %arg12[%c0_6, %c0_7], %7 {strides = array<i32>} : memref<8x128xf32, #tpu.memory_space<vmem>>, vector<8x128xf32>,
    %c0_8 = arith.constant 0 : index
    %c0_9 = arith.constant 0 : index
    %9 = vector.load %arg13[%c0_8, %c0_9] : memref<8x128xf32, #tpu.memory_space<vmem>>, vector<8x128xf32>
    %c0_10 = arith.constant 0 : index
    %c0_11 = arith.constant 0 : index
    %10 = vector.load %arg5[%c0_10, %c0_11] : memref<128x128xbf16, #tpu.memory_space<vmem>>, vector<128x128xbf16>
    %cst_12 = arith.constant dense<0.000000e+00> : vector<8x128xf32>
    %11 = tpu.matmul %3, %10, %cst_12 {dimension_numbers = #tpu.dot_dimension_numbers<[1], [0], [0], [1], [0, 0, 1, 1], [], []>} : vector<8x128xbf16>, vector<128x128xbf16>, vector<8x128xf32> -> vector<8x128xf32>
    %12 = arith.addf %9, %11 : vector<8x128xf32>
    %c0_13 = arith.constant 0 : index
    %c0_14 = arith.constant 0 : index
    %13 = vector.load %arg13[%c0_13, %c0_14] : memref<8x128xf32, #tpu.memory_space<vmem>>, vector<8x128xf32>
    tpu.vector_store %arg13[%c0_13, %c0_14], %12 {strides = array<i32>} : memref<8x128xf32, #tpu.memory_space<vmem>>, vector<8x128xf32>,
    %c0_i32_15 = arith.constant 0 : i32
    %14 = arith.cmpi eq, %arg2, %c0_i32_15 : i32
    %15 = arith.extui %14 : i1 to i32
    %c0_i32_16 = arith.constant 0 : i32
    %16 = arith.cmpi ne, %15, %c0_i32_16 : i32
    scf.if %16 {
      %c0_17 = arith.constant 0 : index
      %c0_18 = arith.constant 0 : index
      %17 = vector.load %arg12[%c0_17, %c0_18] : memref<8x128xf32, #tpu.memory_space<vmem>>, vector<8x128xf32>
      %c0_19 = arith.constant 0 : index
      %c0_20 = arith.constant 0 : index
      %18 = vector.load %arg6[%c0_19, %c0_20] : memref<1x128xf32, #tpu.memory_space<vmem>>, vector<1x128xf32>
      %19 = vector.broadcast %18 : vector<1x128xf32> to vector<8x128xf32>
      %20 = arith.addf %17, %19 : vector<8x128xf32>
      %cst_21 = arith.constant 0.000000e+00 : f32
      %21 = vector.broadcast %cst_21 : f32 to vector<8x128xf32>
      %22 = arith.maximumf %20, %21 : vector<8x128xf32>
      %c0_22 = arith.constant 0 : index
      %c0_23 = arith.constant 0 : index
      %23 = vector.load %arg13[%c0_22, %c0_23] : memref<8x128xf32, #tpu.memory_space<vmem>>, vector<8x128xf32>
      %c0_24 = arith.constant 0 : index
      %c0_25 = arith.constant 0 : index
      %24 = vector.load %arg7[%c0_24, %c0_25] : memref<1x128xf32, #tpu.memory_space<vmem>>, vector<1x128xf32>
      %25 = vector.broadcast %24 : vector<1x128xf32> to vector<8x128xf32>
      %26 = arith.addf %23, %25 : vector<8x128xf32>
      %cst_26 = arith.constant 0.000000e+00 : f32
      %27 = vector.broadcast %cst_26 : f32 to vector<8x128xf32>
      %28 = arith.maximumf %26, %27 : vector<8x128xf32>
      %cst_27 = arith.constant 5.000000e-01 : f32
      %29 = vector.broadcast %cst_27 : f32 to vector<8x128xf32>
      %30 = arith.mulf %28, %29 : vector<8x128xf32>
      %31 = math.exp %30 : vector<8x128xf32>
      %c0_28 = arith.constant 0 : index
      %c0_29 = arith.constant 0 : index
      %32 = vector.load %arg10[%c0_28, %c0_29] : memref<8x128xf32, #tpu.memory_space<vmem>>, vector<8x128xf32>
      tpu.vector_store %arg10[%c0_28, %c0_29], %22 {strides = array<i32>} : memref<8x128xf32, #tpu.memory_space<vmem>>, vector<8x128xf32>,
      %c0_30 = arith.constant 0 : index
      %c0_31 = arith.constant 0 : index
      %33 = vector.load %arg11[%c0_30, %c0_31] : memref<8x128xf32, #tpu.memory_space<vmem>>, vector<8x128xf32>
      tpu.vector_store %arg11[%c0_30, %c0_31], %28 {strides = array<i32>} : memref<8x128xf32, #tpu.memory_space<vmem>>, vector<8x128xf32>,
      %c0_32 = arith.constant 0 : index
      %c0_33 = arith.constant 0 : index
      %34 = vector.load %arg8[%c0_32, %c0_33] : memref<8x128xf32, #tpu.memory_space<vmem>>, vector<8x128xf32>
      %35 = arith.mulf %34, %31 : vector<8x128xf32>
      %36 = arith.addf %35, %22 : vector<8x128xf32>
      %c0_34 = arith.constant 0 : index
      %c0_35 = arith.constant 0 : index
      %37 = vector.load %arg9[%c0_34, %c0_35] : memref<8x128xf32, #tpu.memory_space<vmem>>, vector<8x128xf32>
      tpu.vector_store %arg9[%c0_34, %c0_35], %36 {strides = array<i32>} : memref<8x128xf32, #tpu.memory_space<vmem>>, vector<8x128xf32>,
    } else {
    }
    return
  }
  func.func @transform_0(%arg0: i32, %arg1: i32, %arg2: i32) -> (i32, i32) {
    %c0_i32 = arith.constant 0 : i32
    return %arg0, %arg2 : i32, i32
  }
  func.func @transform_1(%arg0: i32, %arg1: i32, %arg2: i32) -> (i32, i32) {
    %c0_i32 = arith.constant 0 : i32
    return %arg2, %arg1 : i32, i32
  }
  func.func @transform_2(%arg0: i32, %arg1: i32, %arg2: i32) -> (i32, i32) {
    %c0_i32 = arith.constant 0 : i32
    return %arg2, %arg1 : i32, i32
  }
  func.func @transform_3(%arg0: i32, %arg1: i32, %arg2: i32) -> (i32, i32) {
    %c0_i32 = arith.constant 0 : i32
    %c0_i32_0 = arith.constant 0 : i32
    return %c0_i32, %arg1 : i32, i32
  }
  func.func @transform_4(%arg0: i32, %arg1: i32, %arg2: i32) -> (i32, i32) {
    %c0_i32 = arith.constant 0 : i32
    %c0_i32_0 = arith.constant 0 : i32
    return %c0_i32, %arg1 : i32, i32
  }
  func.func @transform_5(%arg0: i32, %arg1: i32, %arg2: i32) -> (i32, i32) {
    %c0_i32 = arith.constant 0 : i32
    return %arg0, %arg1 : i32, i32
  }
  func.func @transform_6(%arg0: i32, %arg1: i32, %arg2: i32) -> (i32, i32) {
    %c0_i32 = arith.constant 0 : i32
    return %arg0, %arg1 : i32, i32
  }
  func.func @transform_7(%arg0: i32, %arg1: i32, %arg2: i32) -> (i32, i32) {
    %c0_i32 = arith.constant 0 : i32
    return %arg0, %arg1 : i32, i32
  }
  func.func @transform_8(%arg0: i32, %arg1: i32, %arg2: i32) -> (i32, i32) {
    %c0_i32 = arith.constant 0 : i32
    return %arg0, %arg1 : i32, i32
  }
}

</mosaic_0001>

<bundles_post_ra>
// kernel: tpu_custom_call.1
= control target key start
LH: loop header
LB: loop body
LE: loop exit
PB: predicated region body
PF: predicated region fallthrough
CT: control target
= control target key end

     0   :  { %14 = vsyncpa [#allocation5], 0  ;;  %s890_s0 = inlined_call_operand.hbm [shape: bf16[8,128], index: 0, kind: input, shape index: {}]   ;;  %s891_s1 = inlined_call_operand.hbm [shape: bf16[128,128], index: 1, kind: input, shape index: {}]   ;;  %s892_s2 = inlined_call_operand.hbm [shape: bf16[128,128], index: 2, kind: input, shape index: {}]   ;;  %s893_s3 = inlined_call_operand.hbm [shape: f32[1,128], index: 3, kind: input, shape index: {}]   ;;  %s894_s4 = inlined_call_operand.hbm [shape: f32[1,128], index: 4, kind: input, shape index: {}]   ;;  %s895_s5 = inlined_call_operand.hbm [shape: f32[8,128], index: 5, kind: input, shape index: {}]   ;;  %s896_s6 = inlined_call_operand.hbm [shape: f32[8,128], index: 6, kind: output, shape index: {0}]   ;;  %s897_s7 = inlined_call_operand.hbm [shape: f32[8,128], index: 7, kind: output, shape index: {1}]   ;;  %s898_s8 = inlined_call_operand.hbm [shape: f32[8,128], index: 8, kind: output, shape index: {2}]  }
   0x1   :  { %15 = vsyncpa [#allocation8], 0 }
   0x2   :  { %16 = vsyncpa [#allocation11], 0 }
   0x3   :  { %17 = vsyncpa [#allocation14], 0 }
   0x4   :  { %18 = vsyncpa [#allocation6], 0 }
   0x5   :  { %19 = vsyncpa [#allocation17], 0  ;;  %s718_s27 = smov [#allocation7]   ;;  %s508_s9 = scalar_lea.hbm %s891_s1, 1024 }
   0x6   :  { %s35_s28 = sshll.u32 %s718_s27, 4  ;;  %p509_p0 = scmp.ne.s32.totalorder %s891_s1, %s508_s9  ;;  %s36_s28 = int_to_ptr.vmem [resolvable:$true] %s35_s28 }
   0x7   :  { %p512_p1 = scmp.lt.u32.totalorder %s508_s9, %s891_s1 }
   0x9   :  { %p514_p2 = pnand %p512_p1, %p509_p0 }
   0xb   :  { %517 = shalt.err (!%p514_p2)
}
   0xc   :  { %s518_s14 = scalar_lea.vmem %s36_s28, 1024  ;;  %p523_p4 = scmp.lt.s32.totalorder %s36_s28, %s36_s28 }
   0xd   :  { %p519_p3 = scmp.ne.s32.totalorder %s36_s28, %s518_s14  ;;  %p524_p5 = scmp.lt.s32.totalorder %s518_s14, %s518_s14 }
   0xf   :  { %p525_p6 = por %p524_p5, %p523_p4 }
  0x11   :  { %p526_p7 = pnand %p525_p6, %p519_p3 }
  0x13   :  { %529 = shalt.err (!%p526_p7)
}
  0x14   :  { %s719_s15 = smov 64   ;;  %s720_s16 = smov 4  }
  0x15   :  { %41 = dma.hbm_to_vmem [thread:$0]  %s891_s1, 1024, %s36_s28, [#allocation8], %s719_s15, %s719_s15, %s720_s16  }
  0x16   :  { %s721_s19 = smov [#allocation10]   ;;  %s722_s21 = smov [#allocation4]  }
  0x17   :  { %s60_s20 = sshll.u32 %s721_s19, 4  ;;  %s26_s22 = sshll.u32 %s722_s21, 4  ;;  %s61_s20 = int_to_ptr.vmem [resolvable:$true] %s60_s20  ;;  %s27_s22 = int_to_ptr.vmem [resolvable:$true] %s26_s22 }
  0x18   :  { %s530_s25 = scalar_lea.hbm %s893_s3, 16 }
  0x19   :  { %p531_p8 = scmp.ne.s32.totalorder %s893_s3, %s530_s25  ;;  %p534_p9 = scmp.lt.u32.totalorder %s530_s25, %s893_s3 }
  0x1b   :  { %p536_p10 = pnand %p534_p9, %p531_p8 }
  0x1d   :  { %539 = shalt.err (!%p536_p10)
}
  0x1e   :  { %s540_s1 = scalar_lea.vmem %s61_s20, 16  ;;  %s544_s28 = scalar_lea.vmem %s61_s20, 32 }
  0x1f   :  { %p541_p11 = scmp.ne.s32.totalorder %s61_s20, %s540_s1  ;;  %p545_p12 = scmp.lt.s32.totalorder %s61_s20, %s61_s20 }
  0x20   :  { %p546_p13 = scmp.lt.s32.totalorder %s544_s28, %s540_s1 }
  0x22   :  { %p547_p0 = por %p546_p13, %p545_p12 }
  0x24   :  { %p548_p1 = pnand %p547_p0, %p541_p11 }
  0x26   :  { %551 = shalt.err (!%p548_p1)
}
  0x27   :  { %63 = dma.hbm_to_vmem [thread:$0]  %s893_s3, 16, %s61_s20, [#allocation11]  }
  0x28   :  { %s552_s13 = scalar_lea.hbm %s890_s0, 64 }
  0x29   :  { %p553_p2 = scmp.ne.s32.totalorder %s890_s0, %s552_s13  ;;  %p556_p3 = scmp.lt.u32.totalorder %s552_s13, %s890_s0 }
  0x2b   :  { %p558_p4 = pnand %p556_p3, %p553_p2 }
  0x2d   :  { %561 = shalt.err (!%p558_p4)
}
  0x2e   :  { %s562_s21 = scalar_lea.vmem %s27_s22, 64  ;;  %p567_p6 = scmp.lt.s32.totalorder %s27_s22, %s27_s22 }
  0x2f   :  { %p563_p5 = scmp.ne.s32.totalorder %s27_s22, %s562_s21  ;;  %p568_p7 = scmp.lt.s32.totalorder %s562_s21, %s562_s21 }
  0x31   :  { %p569_p8 = por %p568_p7, %p567_p6 }
  0x33   :  { %p570_p9 = pnand %p569_p8, %p563_p5 }
  0x35   :  { %573 = shalt.err (!%p570_p9)
}
  0x36   :  { %29 = dma.hbm_to_vmem [thread:$0]  %s890_s0, 64, %s27_s22, [#allocation5]  }
  0x37   :  { %s723_s23 = smov [#allocation9]   ;;  %s724_s25 = smov [#allocation12]  }
  0x38   :  { %s47_s24 = sshll.u32 %s723_s23, 4  ;;  %s70_s26 = sshll.u32 %s724_s25, 4  ;;  %s48_s24 = int_to_ptr.vmem [resolvable:$true] %s47_s24  ;;  %s71_s26 = int_to_ptr.vmem [resolvable:$true] %s70_s26 }
  0x39   :  { %s574_s30 = scalar_lea.hbm %s892_s2, 1024 }
  0x3a   :  { %p575_p10 = scmp.ne.s32.totalorder %s892_s2, %s574_s30  ;;  %p578_p11 = scmp.lt.u32.totalorder %s574_s30, %s892_s2 }
  0x3c   :  { %p580_p12 = pnand %p578_p11, %p575_p10 }
  0x3e   :  { %583 = shalt.err (!%p580_p12)
}
  0x3f   :  { %s584_s0 = scalar_lea.vmem %s48_s24, 1024  ;;  %p589_p0 = scmp.lt.s32.totalorder %s48_s24, %s48_s24 }
  0x40   :  { %p585_p13 = scmp.ne.s32.totalorder %s48_s24, %s584_s0  ;;  %p590_p1 = scmp.lt.s32.totalorder %s584_s0, %s584_s0 }
  0x42   :  { %p591_p2 = por %p590_p1, %p589_p0 }
  0x44   :  { %p592_p3 = pnand %p591_p2, %p585_p13 }
  0x46   :  { %595 = shalt.err (!%p592_p3)
}
  0x47   :  { %53 = dma.hbm_to_vmem [thread:$0]  %s892_s2, 1024, %s48_s24, [#allocation8], %s719_s15, %s719_s15, %s720_s16  }
  0x48   :  { %s596_s14 = scalar_lea.hbm %s894_s4, 16 }
  0x49   :  { %p597_p4 = scmp.ne.s32.totalorder %s894_s4, %s596_s14  ;;  %p600_p5 = scmp.lt.u32.totalorder %s596_s14, %s894_s4 }
  0x4b   :  { %p602_p6 = pnand %p600_p5, %p597_p4 }
  0x4d   :  { %605 = shalt.err (!%p602_p6)
}
  0x4e   :  { %s606_s3 = scalar_lea.vmem %s71_s26, 16  ;;  %s610_s20 = scalar_lea.vmem %s71_s26, 32 }
  0x4f   :  { %p607_p7 = scmp.ne.s32.totalorder %s71_s26, %s606_s3  ;;  %p611_p8 = scmp.lt.s32.totalorder %s71_s26, %s71_s26 }
  0x50   :  { %p612_p9 = scmp.lt.s32.totalorder %s610_s20, %s606_s3 }
  0x52   :  { %p613_p10 = por %p612_p9, %p611_p8 }
  0x54   :  { %p614_p11 = pnand %p613_p10, %p607_p7 }
  0x56   :  { %617 = shalt.err (!%p614_p11)
}
  0x57   :  { %73 = dma.hbm_to_vmem [thread:$0]  %s894_s4, 16, %s71_s26, [#allocation11]  }
  0x58   :  { %s725_s16 = smov [#allocation13]   ;;  %s618_s27 = scalar_lea.hbm %s895_s5, 128 }
  0x59   :  { %s80_s23 = sshll.u32 %s725_s16, 4  ;;  %p619_p12 = scmp.ne.s32.totalorder %s895_s5, %s618_s27  ;;  %s81_s23 = int_to_ptr.vmem [resolvable:$true] %s80_s23 }
  0x5a   :  { %p622_p13 = scmp.lt.u32.totalorder %s618_s27, %s895_s5 }
  0x5c   :  { %p624_p0 = pnand %p622_p13, %p619_p12 }
  0x5e   :  { %627 = shalt.err (!%p624_p0)
}
  0x5f   :  { %s628_s9 = scalar_lea.vmem %s81_s23, 128  ;;  %p633_p2 = scmp.lt.s32.totalorder %s81_s23, %s81_s23 }
  0x60   :  { %p629_p1 = scmp.ne.s32.totalorder %s81_s23, %s628_s9  ;;  %p634_p3 = scmp.lt.s32.totalorder %s628_s9, %s628_s9 }
  0x62   :  { %p635_p4 = por %p634_p3, %p633_p2 }
  0x64   :  { %p636_p5 = pnand %p635_p4, %p629_p1 }
  0x66   :  { %639 = shalt.err (!%p636_p5)
}
  0x67   :  { %83 = dma.hbm_to_vmem [thread:$0]  %s895_s5, 128, %s81_s23, [#allocation14]  }
  0x68   :  { %706 = dma.done.wait [#allocation5], 64  }
  0x69   :  { %707 = vsyncadd [#allocation5], 4294967232 }
  0x6a   :  { %708 = dma.done.wait [#allocation8], 2048  }
  0x6b   :  { %709 = vsyncadd [#allocation8], 4294965248 }
  0x6c   :  { %710 = dma.done.wait [#allocation11], 32  }
  0x6d   :  { %711 = vsyncadd [#allocation11], 4294967264 }
  0x6e   :  { %712 = dma.done.wait [#allocation14], 128  }
  0x6f   :  { %713 = vsyncadd [#allocation14], 4294967168  ;;  %v726_v0 = vmov 0.0   ;;  %vm727_vm0 = vmmov 0   ;;  %v490_v1 = vld [vmem:[#allocation9] sm:$0xff]   ;;  %v491_v2 = vld [vmem:[#allocation9 + $0x8] sm:$0xff]  }
  0x70   :  { %457 = vmatprep.subr.bf16.mxu1 %v726_v0  ;;  %437 = vmatprep.subr.bf16.mxu0 %v726_v0  ;;  %v494_v3 = vld [vmem:[#allocation7] sm:$0xff]   ;;  %v492_v4 = vld [vmem:[#allocation9 + $0x10] sm:$0xff]   ;;  %v496_v5 = vld [vmem:[#allocation7 + $0x8] sm:$0xff]   ;;  %s728_s5 = smov [#allocation16]   ;;  %s729_s0 = smov [#allocation18]  }
  0x71   :  { %473 = vmatprep.mubr.msk.bf16.mxu1 %vm727_vm0, %v726_v0  ;;  %453 = vmatprep.mubr.msk.bf16.mxu0 %vm727_vm0, %v726_v0  ;;  %v493_v6 = vld [vmem:[#allocation9 + $0x18] sm:$0xff]   ;;  %v498_v7 = vld [vmem:[#allocation7 + $0x10] sm:$0xff]   ;;  %v495_v8 = vld [vmem:[#allocation9 + $0x20] sm:$0xff]   ;;  %s372_s10 = sshll.u32 %s728_s5, 4  ;;  %s382_s22 = sshll.u32 %s729_s0, 4  ;;  %s373_s10 = int_to_ptr.vmem [resolvable:$true] %s372_s10  ;;  %s383_s22 = int_to_ptr.vmem [resolvable:$true] %s382_s22 }
  0x72   :  { %458 = vmatpush3.bf16.msra.mxu1 %v490_v1  ;;  %438 = vmatpush3.bf16.msra.mxu0 %v494_v3  ;;  %v500_v9 = vld [vmem:[#allocation7 + $0x18] sm:$0xff]   ;;  %v497_v10 = vld [vmem:[#allocation9 + $0x28] sm:$0xff]   ;;  %v502_v11 = vld [vmem:[#allocation7 + $0x20] sm:$0xff]   ;;  %s640_s11 = scalar_lea.vmem %s373_s10, 128  ;;  %p645_p7 = scmp.lt.s32.totalorder %s373_s10, %s373_s10 }
  0x73   :  { %459 = vmatprep.subr.bf16.mxu1 %v726_v0  ;;  %439 = vmatprep.subr.bf16.mxu0 %v726_v0  ;;  %v499_v12 = vld [vmem:[#allocation9 + $0x30] sm:$0xff]   ;;  %v503_v13 = vld [vmem:[#allocation7 + $0x28] sm:$0xff]   ;;  %v501_v14 = vld [vmem:[#allocation9 + $0x38] sm:$0xff]   ;;  %p641_p6 = scmp.ne.s32.totalorder %s373_s10, %s640_s11  ;;  %p646_p8 = scmp.lt.s32.totalorder %s640_s11, %s640_s11 }
  0x74   :  { %v504_v15 = vld [vmem:[#allocation7 + $0x30] sm:$0xff]   ;;  %v109_v16 = vld [vmem:[#allocation4] sm:$0xf]  ;;  %v418_v18 = vld [vmem:[#allocation12] ss:$0 sm:$0xff] }
  0x75   :  { %v505_v17 = vld [vmem:[#allocation7 + $0x38] sm:$0xff]   ;;  %v417_v23 = vld [vmem:[#allocation10] ss:$0 sm:$0xff]  ;;  %p647_p9 = por %p646_p8, %p645_p7 }
  0x76   :  { %460 = vmatpush3.bf16.msra.mxu1 %v491_v2  ;;  %440 = vmatpush3.bf16.msra.mxu0 %v496_v5 }
  0x77   :  { %461 = vmatprep.subr.bf16.mxu1 %v726_v0  ;;  %441 = vmatprep.subr.bf16.mxu0 %v726_v0  ;;  %p648_p10 = pnand %p647_p9, %p641_p6 }
  0x7a   :  { %462 = vmatpush3.bf16.msra.mxu1 %v492_v4  ;;  %442 = vmatpush3.bf16.msra.mxu0 %v498_v7 }
  0x7b   :  { %463 = vmatprep.subr.bf16.mxu1 %v726_v0  ;;  %443 = vmatprep.subr.bf16.mxu0 %v726_v0 }
  0x7e   :  { %464 = vmatpush3.bf16.msra.mxu1 %v493_v6  ;;  %444 = vmatpush3.bf16.msra.mxu0 %v500_v9 }
  0x7f   :  { %465 = vmatprep.subr.bf16.mxu1 %v726_v0  ;;  %445 = vmatprep.subr.bf16.mxu0 %v726_v0 }
  0x82   :  { %466 = vmatpush3.bf16.msra.mxu1 %v495_v8  ;;  %446 = vmatpush3.bf16.msra.mxu0 %v502_v11 }
  0x83   :  { %467 = vmatprep.subr.bf16.mxu1 %v726_v0  ;;  %447 = vmatprep.subr.bf16.mxu0 %v726_v0 }
  0x86   :  { %468 = vmatpush3.bf16.msra.mxu1 %v497_v10  ;;  %448 = vmatpush3.bf16.msra.mxu0 %v503_v13 }
  0x87   :  { %469 = vmatprep.subr.bf16.mxu1 %v726_v0  ;;  %449 = vmatprep.subr.bf16.mxu0 %v726_v0 }
  0x8a   :  { %470 = vmatpush3.bf16.msra.mxu1 %v499_v12  ;;  %450 = vmatpush3.bf16.msra.mxu0 %v504_v15 }
  0x8b   :  { %471 = vmatprep.subr.bf16.mxu1 %v726_v0  ;;  %451 = vmatprep.subr.bf16.mxu0 %v726_v0 }
  0x8e   :  { %472 = vmatpush3.bf16.msra.mxu1 %v501_v14  ;;  %452 = vmatpush3.bf16.msra.mxu0 %v505_v17 }
  0x91   :  { %474 = vmatmul.mubr.bf16.vlgmr.msra.gmra.mrb[0].mxu1 %v109_v16  ;;  %454 = vmatmul.mubr.bf16.vlgmr.msra.gmra.mrb[0].mxu0 %v109_v16 }
 0x164   :  { %v316_v19 = vpop.f32.mrb[0].mxu1  ;;  %v209_v26 = vpop.f32.mrb[0].mxu0 }
 0x165   :  { %v345_v20 = vadd.f32 %v418_v18, %v316_v19  ;;  %v475_v21 = vpop.f32.mrb[1].mxu1  ;;  %v335_v28 = vadd.f32 %v417_v23, %v209_v26  ;;  %v455_v29 = vpop.f32.mrb[1].mxu0 }
 0x166   :  { %v319_v22 = vpop.f32.mrb[2].mxu1  ;;  %v212_v30 = vpop.f32.mrb[2].mxu0 }
 0x167   :  { %v346_v24 = vmax.f32 %v345_v20, 0.0  ;;  %v476_v25 = vpop.f32.mrb[3].mxu1  ;;  %v336_v32 = vmax.f32 %v335_v28, 0.0  ;;  %v456_v33 = vpop.f32.mrb[3].mxu0 }
 0x169   :  { %v347_v27 = vmul.f32 0.5, %v346_v24  ;;  %351 = vst [vmem:[#allocation18] sm:$0xff] %v346_v24  ;;  %350 = vst [vmem:[#allocation16] sm:$0xff] %v336_v32 }
 0x16b   :  { %v348_v31 = vmul.f32 1.442695, %v347_v27 }
 0x16d   :  { %506 = vpow2.f32 %v348_v31 }
 0x16e   :  { %651 = shalt.err (!%p648_p10)
}
 0x16f   :  { %s652_s14 = scalar_lea.hbm %s897_s7, 128 }
 0x170   :  { %p653_p11 = scmp.ne.s32.totalorder %s897_s7, %s652_s14  ;;  %p656_p12 = scmp.lt.u32.totalorder %s652_s14, %s897_s7 }
 0x172   :  { %p658_p13 = pnand %p656_p12, %p653_p11 }
 0x174   :  { %661 = shalt.err (!%p658_p13)
}
 0x175   :  { %375 = dma.vmem_to_hbm [thread:$0]  %s373_s10, 128, %s897_s7, [#allocation17]  }
 0x176   :  { %s662_s2 = scalar_lea.vmem %s383_s22, 128  ;;  %p667_p1 = scmp.lt.s32.totalorder %s383_s22, %s383_s22 }
 0x177   :  { %p663_p0 = scmp.ne.s32.totalorder %s383_s22, %s662_s2  ;;  %p668_p2 = scmp.lt.s32.totalorder %s662_s2, %s662_s2 }
 0x179   :  { %p669_p3 = por %p668_p2, %p667_p1 }
 0x17b   :  { %p670_p4 = pnand %p669_p3, %p663_p0 }
 0x17d   :  { %673 = shalt.err (!%p670_p4)
}
 0x17e   :  { %s674_s23 = scalar_lea.hbm %s898_s8, 128 }
 0x17f   :  { %p675_p5 = scmp.ne.s32.totalorder %s898_s8, %s674_s23  ;;  %p678_p6 = scmp.lt.u32.totalorder %s674_s23, %s898_s8 }
 0x181   :  { %p680_p7 = pnand %p678_p6, %p675_p5 }
 0x183   :  { %683 = shalt.err (!%p680_p7)
}
 0x184   :  { %385 = dma.vmem_to_hbm [thread:$0]  %s383_s22, 128, %s898_s8, [#allocation17]   ;;  %v352_v34 = vld [vmem:[#allocation13] sm:$0xff]  ;;  %v507_v35 = vpop.eup %506 }
 0x185   :  { %s730_s1 = smov [#allocation15]   ;;  %v353_v36 = vmul.f32 %v507_v35, %v352_v34 }
 0x186   :  { %s362_s28 = sshll.u32 %s730_s1, 4  ;;  %s363_s28 = int_to_ptr.vmem [resolvable:$true] %s362_s28 }
 0x187   :  { %v354_v37 = vadd.f32 %v353_v36, %v336_v32  ;;  %s684_s9 = scalar_lea.vmem %s363_s28, 128  ;;  %p689_p9 = scmp.lt.s32.totalorder %s363_s28, %s363_s28 }
 0x188   :  { %p685_p8 = scmp.ne.s32.totalorder %s363_s28, %s684_s9  ;;  %p690_p10 = scmp.lt.s32.totalorder %s684_s9, %s684_s9 }
 0x189   :  { %355 = vst [vmem:[#allocation15] sm:$0xff] %v354_v37 }
 0x18a   :  { %p691_p11 = por %p690_p10, %p689_p9 }
 0x18c   :  { %p692_p12 = pnand %p691_p11, %p685_p8 }
 0x18e   :  { %695 = shalt.err (!%p692_p12)
}
 0x18f   :  { %s696_s5 = scalar_lea.hbm %s896_s6, 128 }
 0x190   :  { %p697_p13 = scmp.ne.s32.totalorder %s896_s6, %s696_s5  ;;  %p700_p0 = scmp.lt.u32.totalorder %s696_s5, %s896_s6 }
 0x192   :  { %p702_p1 = pnand %p700_p0, %p697_p13 }
 0x194   :  { %705 = shalt.err (!%p702_p1)
}
 0x195   :  { %365 = dma.vmem_to_hbm [thread:$0]  %s363_s28, 128, %s896_s6, [#allocation6]  }
 0x196   :  { %714 = dma.done.wait [#allocation6], 128  }
 0x197   :  { %715 = vsyncadd [#allocation6], 4294967168 }
 0x198   :  { %716 = dma.done.wait [#allocation17], 256  }
 0x199   :  { %717 = vsyncadd [#allocation17], 4294967040 }
 0x19a   :  { %395 = vsyncpa [#allocation5], 1 }
 0x19b   :  { %396 = vsyncpa [#allocation8], 1 }
 0x19c   :  { %397 = vsyncpa [#allocation11], 1 }
 0x19d   :  { %398 = vsyncpa [#allocation14], 1 }
 0x19e   :  { %399 = vsyncpa [#allocation6], 1 }
 0x19f   :  { %400 = vsyncpa [#allocation17], 1 }

</bundles_post_ra>
